<compile_context>
chip_gen: v5e
topology: v5e:2x2
jax: 0.10.0
libtpu: 0.0.40
codegen_flags: <defaults>
</compile_context>

<pallas_src>
import random as pyrandom

import numpy as np
import jax
import jax.numpy as jnp
from jax.experimental import pallas as pl
from jax.experimental.pallas import tpu as pltpu


def _copy_paste_kernel(s_ref, img_ref, lbl_ref, imgc_ref, lblc_ref,
                       img_out_ref, lbl_out_ref):
    """Elementwise masked paste over one (C, TILE_H, W) row-slab.

    s_ref    : SMEM scalar prefetch, int32[3] = (paste_id, lo_block, hi_block)
    img_ref  : (C, TILE_H, W) image tile
    lbl_ref  : (1, TILE_H, W) label tile
    imgc_ref : (C, TILE_H, W) image_copy canvas tile (clamped into window)
    lblc_ref : (1, TILE_H, W) label_copy canvas tile (ignore_index outside
               the paste window, so the mask is False there)
    """
    i = pl.program_id(0)
    paste_id = s_ref[0]
    in_window = jnp.logical_and(i >= s_ref[1], i <= s_ref[2])

    @pl.when(in_window)
    def _():
        # mask stays (1, TILE_H, W); jnp.where broadcasts it over C for the
        # image select (keeps vreg pressure low).
        mask = lblc_ref[...] == paste_id
        img_out_ref[...] = jnp.where(mask, imgc_ref[...], img_ref[...])
        lbl_out_ref[...] = jnp.where(mask, lblc_ref[...], lbl_ref[...])

    @pl.when(jnp.logical_not(in_window))
    def _():
        # Tile does not intersect the paste window: pure copy-through.
        img_out_ref[...] = img_ref[...]
        lbl_out_ref[...] = lbl_ref[...]


def paste_with_mask(image, label, image_copy_canvas, label_copy_canvas,
                    paste_id, ph, rh, *, tile_h=None):
    C, H, W = image.shape
    CL = label.shape[0]

    if tile_h is None:
        # Modest default: keeps the 6-stream double-buffered working set small
        # enough for v7x (64 MiB VMEM / 32 MiB scoped default) while still
        # amortizing the ~0.35us per-grid-step overhead on v5e/v6e.
        tile_h = min(H, 64)
    if H % tile_h != 0 or tile_h % 8 != 0:
        # Fall back to a single full-H block (always legal: full extent).
        tile_h = H
    grid = (H // tile_h,)

    # Paste-window row range expressed in H-tile (block) indices; host ints.
    lo_blk = ph // tile_h
    hi_blk = (ph + rh - 1) // tile_h
    scalars = jnp.asarray([paste_id, lo_blk, hi_blk], dtype=jnp.int32)

    def data_map(i, s):
        return (0, i, 0)

    def canvas_map(i, s):
        # Clamp into the paste-window block range: out-of-window tiles keep a
        # constant block index, so Pallas skips re-DMA of the canvas for
        # consecutive out-of-window steps (their data is unused anyway).
        return (0, jnp.minimum(jnp.maximum(i, s[1]), s[2]), 0)

    grid_spec = pltpu.PrefetchScalarGridSpec(
        num_scalar_prefetch=1,
        grid=grid,
        in_specs=[
            pl.BlockSpec((C, tile_h, W), data_map),
            pl.BlockSpec((CL, tile_h, W), data_map),
            pl.BlockSpec((C, tile_h, W), canvas_map),
            pl.BlockSpec((CL, tile_h, W), canvas_map),
        ],
        out_specs=[
            pl.BlockSpec((C, tile_h, W), data_map),
            pl.BlockSpec((CL, tile_h, W), data_map),
        ],
    )

    return pl.pallas_call(
        _copy_paste_kernel,
        grid_spec=grid_spec,
        out_shape=(
            jax.ShapeDtypeStruct(image.shape, image.dtype),
            jax.ShapeDtypeStruct(label.shape, label.dtype),
        ),
        # "parallel": row tiles are independent -> Mosaic can shard them
        # across v7x's two TensorCores; harmless on v5e/v6e.
        compiler_params=pltpu.CompilerParams(
            dimension_semantics=("parallel",)),
    )(scalars, image, label, image_copy_canvas, label_copy_canvas)


class CopyPaste:
    """JAX/Pallas re-implementation of the PyTorch CopyPaste transform."""

    def __init__(self, ignore_index=255, p=0, use_pallas=True):
        self.ignore_index = ignore_index
        self.p = p
        self.use_pallas = use_pallas

    def __call__(self, data):
        image, label, image_copy, label_copy = data
        if pyrandom.random() < self.p:
            _, h, w = image.shape
            r = pyrandom.uniform(0.5, 1.0)
            rh, rw = int(r * h), int(r * w)
            ph = int((h - rh) * pyrandom.random())
            pw = int((w - rw) * pyrandom.random())

            # --- host glue: resize (bilinear / nearest), optional h-flip ---
            # TODO(synk): bilinear resize runs in plain JAX (jax.image.resize),
            # not in-kernel; TorchVision's bilinear edge handling may differ
            # by sub-pixel amounts.
            image_copy_r = jax.image.resize(
                image_copy, (image_copy.shape[0], rh, rw), method="bilinear"
            ).astype(image.dtype)
            label_copy_r = jax.image.resize(
                label_copy, (label_copy.shape[0], rh, rw), method="nearest"
            ).astype(label.dtype)

            if pyrandom.random() < 0.5:
                image_copy_r = jnp.flip(image_copy_r, axis=2)
                label_copy_r = jnp.flip(label_copy_r, axis=2)

            # --- choose a class id present in label_copy (not ignore_index) ---
            # Unique is computed on host (numpy): avoids the data-dependent-
            # shape jnp.unique and matches torch's random.choice semantics.
            lbl_np = np.asarray(jax.device_get(label_copy_r))
            ids = np.unique(lbl_np[lbl_np != self.ignore_index])
            if ids.size == 0:
                # Guard: torch's choice([]) would raise; we just skip the paste.
                return image, label
            paste_id = int(pyrandom.choice(ids))

            # --- place resized copies into full-size canvases at (ph, pw) ---
            lbl_canvas = jnp.full(label.shape, self.ignore_index, dtype=label.dtype)
            lbl_canvas = jax.lax.dynamic_update_slice(
                lbl_canvas, label_copy_r, (0, ph, pw))
            img_canvas = jnp.zeros(image.shape, dtype=image.dtype)
            img_canvas = jax.lax.dynamic_update_slice(
                img_canvas, image_copy_r, (0, ph, pw))

            if self.use_pallas:
                # --- hot path: tiled masked paste in the Pallas kernel ---
                image, label = paste_with_mask(
                    image, label, img_canvas, lbl_canvas, paste_id, ph, rh)
            else:
                # Pure-JAX reference path (for correctness checking).
                mask = lbl_canvas == paste_id
                image = jnp.where(mask, img_canvas, image)
                label = jnp.where(mask, lbl_canvas, label)

        return image, label


if __name__ == "__main__":
    key = jax.random.PRNGKey(0)
    k1, k2, k3, k4 = jax.random.split(key, 4)

    C, H, W = 3, 128, 128          # W multiple of 128 -> lane-dense stores
    image = jax.random.normal(k1, (C, H, W), dtype=jnp.float32)
    label = jax.random.randint(k2, (1, H, W), 0, 5, dtype=jnp.int32)
    image_copy = jax.random.normal(k3, (C, H, W), dtype=jnp.float32)
    label_copy = jax.random.randint(k4, (1, H, W), 0, 5, dtype=jnp.int32)

    # Pallas path.
    pyrandom.seed(0)
    out_image, out_label = CopyPaste(ignore_index=255, p=1.0, use_pallas=True)(
        (image, label, image_copy, label_copy))
    jax.block_until_ready(out_image)
    jax.block_until_ready(out_label)

    # Pure-JAX reference with identical host randomness.
    pyrandom.seed(0)
    ref_image, ref_label = CopyPaste(ignore_index=255, p=1.0, use_pallas=False)(
        (image, label, image_copy, label_copy))
    jax.block_until_ready(ref_image)

    assert out_image.shape == (C, H, W) and out_image.dtype == jnp.float32
    assert out_label.shape == (1, H, W) and out_label.dtype == jnp.int32
    np.testing.assert_allclose(np.asarray(out_image), np.asarray(ref_image),
                               rtol=0, atol=0)
    np.testing.assert_array_equal(np.asarray(out_label), np.asarray(ref_label))
    print("KERNEL_OK")
</pallas_src>

<mosaic_0001>
module attributes {stable_mosaic.version = 11 : i64} {
  func.func @_copy_paste_kernel(%arg0: i32, %arg1: memref<3xi32, #tpu.memory_space<smem>>, %arg2: memref<3x64x128xf32, #tpu.memory_space<vmem>>, %arg3: memref<1x64x128xi32, #tpu.memory_space<vmem>>, %arg4: memref<3x64x128xf32, #tpu.memory_space<vmem>>, %arg5: memref<1x64x128xi32, #tpu.memory_space<vmem>>, %arg6: memref<3x64x128xf32, #tpu.memory_space<vmem>>, %arg7: memref<1x64x128xi32, #tpu.memory_space<vmem>>) attributes {dimension_semantics = [#tpu.dimension_semantics<parallel>], iteration_bounds = array<i64: 2>, scalar_prefetch = 1 : i64, scratch_operands = 0 : i64, tpu.core_type = #tpu.core_type<tc>, window_params = [{transform_indices = @transform_0, window_bounds = array<i64: 3, 64, 128>}, {transform_indices = @transform_1, window_bounds = array<i64: 1, 64, 128>}, {transform_indices = @transform_2, window_bounds = array<i64: 3, 64, 128>}, {transform_indices = @transform_3, window_bounds = array<i64: 1, 64, 128>}, {transform_indices = @transform_4, window_bounds = array<i64: 3, 64, 128>}, {transform_indices = @transform_5, window_bounds = array<i64: 1, 64, 128>}]} {
    %c0 = arith.constant 0 : index
    %0 = memref.load %arg1[%c0] : memref<3xi32, #tpu.memory_space<smem>>
    %c1 = arith.constant 1 : index
    %1 = memref.load %arg1[%c1] : memref<3xi32, #tpu.memory_space<smem>>
    %2 = arith.cmpi sge, %arg0, %1 : i32
    %c2 = arith.constant 2 : index
    %3 = memref.load %arg1[%c2] : memref<3xi32, #tpu.memory_space<smem>>
    %4 = arith.cmpi sle, %arg0, %3 : i32
    %5 = arith.andi %2, %4 : i1
    %6 = arith.extui %5 : i1 to i32
    %c0_i32 = arith.constant 0 : i32
    %7 = arith.cmpi ne, %6, %c0_i32 : i32
    scf.if %7 {
      %c0_1 = arith.constant 0 : index
      %c0_2 = arith.constant 0 : index
      %c0_3 = arith.constant 0 : index
      %11 = vector.load %arg5[%c0_1, %c0_2, %c0_3] : memref<1x64x128xi32, #tpu.memory_space<vmem>>, vector<1x64x128xi32>
      %12 = vector.broadcast %0 : i32 to vector<1x64x128xi32>
      %13 = arith.cmpi eq, %11, %12 : vector<1x64x128xi32>
      %c0_4 = arith.constant 0 : index
      %c0_5 = arith.constant 0 : index
      %c0_6 = arith.constant 0 : index
      %14 = vector.load %arg4[%c0_4, %c0_5, %c0_6] : memref<3x64x128xf32, #tpu.memory_space<vmem>>, vector<3x64x128xf32>
      %c0_7 = arith.constant 0 : index
      %c0_8 = arith.constant 0 : index
      %c0_9 = arith.constant 0 : index
      %15 = vector.load %arg2[%c0_7, %c0_8, %c0_9] : memref<3x64x128xf32, #tpu.memory_space<vmem>>, vector<3x64x128xf32>
      %16 = vector.shape_cast %13 : vector<1x64x128xi1> to vector<1x64x128xi1>
      %17 = vector.broadcast %16 : vector<1x64x128xi1> to vector<3x64x128xi1>
      %18 = arith.select %17, %14, %15 : vector<3x64x128xi1>, vector<3x64x128xf32>
      %c0_10 = arith.constant 0 : index
      %c0_11 = arith.constant 0 : index
      %c0_12 = arith.constant 0 : index
      %19 = vector.load %arg6[%c0_10, %c0_11, %c0_12] : memref<3x64x128xf32, #tpu.memory_space<vmem>>, vector<3x64x128xf32>
      tpu.vector_store %arg6[%c0_10, %c0_11, %c0_12], %18 {strides = array<i32>} : memref<3x64x128xf32, #tpu.memory_space<vmem>>, vector<3x64x128xf32>,
      %c0_13 = arith.constant 0 : index
      %c0_14 = arith.constant 0 : index
      %c0_15 = arith.constant 0 : index
      %20 = vector.load %arg5[%c0_13, %c0_14, %c0_15] : memref<1x64x128xi32, #tpu.memory_space<vmem>>, vector<1x64x128xi32>
      %c0_16 = arith.constant 0 : index
      %c0_17 = arith.constant 0 : index
      %c0_18 = arith.constant 0 : index
      %21 = vector.load %arg3[%c0_16, %c0_17, %c0_18] : memref<1x64x128xi32, #tpu.memory_space<vmem>>, vector<1x64x128xi32>
      %22 = arith.select %13, %20, %21 : vector<1x64x128xi1>, vector<1x64x128xi32>
      %c0_19 = arith.constant 0 : index
      %c0_20 = arith.constant 0 : index
      %c0_21 = arith.constant 0 : index
      %23 = vector.load %arg7[%c0_19, %c0_20, %c0_21] : memref<1x64x128xi32, #tpu.memory_space<vmem>>, vector<1x64x128xi32>
      tpu.vector_store %arg7[%c0_19, %c0_20, %c0_21], %22 {strides = array<i32>} : memref<1x64x128xi32, #tpu.memory_space<vmem>>, vector<1x64x128xi32>,
    } else {
    }
    %true = arith.constant true
    %8 = arith.xori %5, %true : i1
    %9 = arith.extui %8 : i1 to i32
    %c0_i32_0 = arith.constant 0 : i32
    %10 = arith.cmpi ne, %9, %c0_i32_0 : i32
    scf.if %10 {
      %c0_1 = arith.constant 0 : index
      %c0_2 = arith.constant 0 : index
      %c0_3 = arith.constant 0 : index
      %11 = vector.load %arg2[%c0_1, %c0_2, %c0_3] : memref<3x64x128xf32, #tpu.memory_space<vmem>>, vector<3x64x128xf32>
      %c0_4 = arith.constant 0 : index
      %c0_5 = arith.constant 0 : index
      %c0_6 = arith.constant 0 : index
      %12 = vector.load %arg6[%c0_4, %c0_5, %c0_6] : memref<3x64x128xf32, #tpu.memory_space<vmem>>, vector<3x64x128xf32>
      tpu.vector_store %arg6[%c0_4, %c0_5, %c0_6], %11 {strides = array<i32>} : memref<3x64x128xf32, #tpu.memory_space<vmem>>, vector<3x64x128xf32>,
      %c0_7 = arith.constant 0 : index
      %c0_8 = arith.constant 0 : index
      %c0_9 = arith.constant 0 : index
      %13 = vector.load %arg3[%c0_7, %c0_8, %c0_9] : memref<1x64x128xi32, #tpu.memory_space<vmem>>, vector<1x64x128xi32>
      %c0_10 = arith.constant 0 : index
      %c0_11 = arith.constant 0 : index
      %c0_12 = arith.constant 0 : index
      %14 = vector.load %arg7[%c0_10, %c0_11, %c0_12] : memref<1x64x128xi32, #tpu.memory_space<vmem>>, vector<1x64x128xi32>
      tpu.vector_store %arg7[%c0_10, %c0_11, %c0_12], %13 {strides = array<i32>} : memref<1x64x128xi32, #tpu.memory_space<vmem>>, vector<1x64x128xi32>,
    } else {
    }
    return
  }
  func.func @transform_0(%arg0: i32, %arg1: memref<3xi32, #tpu.memory_space<smem>>) -> (i32, i32, i32) {
    %c0_i32 = arith.constant 0 : i32
    %c0_i32_0 = arith.constant 0 : i32
    %c0_i32_1 = arith.constant 0 : i32
    return %c0_i32, %arg0, %c0_i32_0 : i32, i32, i32
  }
  func.func @transform_1(%arg0: i32, %arg1: memref<3xi32, #tpu.memory_space<smem>>) -> (i32, i32, i32) {
    %c0_i32 = arith.constant 0 : i32
    %c0_i32_0 = arith.constant 0 : i32
    %c0_i32_1 = arith.constant 0 : i32
    return %c0_i32, %arg0, %c0_i32_0 : i32, i32, i32
  }
  func.func @transform_2(%arg0: i32, %arg1: memref<3xi32, #tpu.memory_space<smem>>) -> (i32, i32, i32) {
    %c1 = arith.constant 1 : index
    %0 = memref.load %arg1[%c1] : memref<3xi32, #tpu.memory_space<smem>>
    %1 = arith.maxsi %arg0, %0 : i32
    %c2 = arith.constant 2 : index
    %2 = memref.load %arg1[%c2] : memref<3xi32, #tpu.memory_space<smem>>
    %3 = arith.minsi %1, %2 : i32
    %c0_i32 = arith.constant 0 : i32
    %c0_i32_0 = arith.constant 0 : i32
    %c0_i32_1 = arith.constant 0 : i32
    return %c0_i32, %3, %c0_i32_0 : i32, i32, i32
  }
  func.func @transform_3(%arg0: i32, %arg1: memref<3xi32, #tpu.memory_space<smem>>) -> (i32, i32, i32) {
    %c1 = arith.constant 1 : index
    %0 = memref.load %arg1[%c1] : memref<3xi32, #tpu.memory_space<smem>>
    %1 = arith.maxsi %arg0, %0 : i32
    %c2 = arith.constant 2 : index
    %2 = memref.load %arg1[%c2] : memref<3xi32, #tpu.memory_space<smem>>
    %3 = arith.minsi %1, %2 : i32
    %c0_i32 = arith.constant 0 : i32
    %c0_i32_0 = arith.constant 0 : i32
    %c0_i32_1 = arith.constant 0 : i32
    return %c0_i32, %3, %c0_i32_0 : i32, i32, i32
  }
  func.func @transform_4(%arg0: i32, %arg1: memref<3xi32, #tpu.memory_space<smem>>) -> (i32, i32, i32) {
    %c0_i32 = arith.constant 0 : i32
    %c0_i32_0 = arith.constant 0 : i32
    %c0_i32_1 = arith.constant 0 : i32
    return %c0_i32, %arg0, %c0_i32_0 : i32, i32, i32
  }
  func.func @transform_5(%arg0: i32, %arg1: memref<3xi32, #tpu.memory_space<smem>>) -> (i32, i32, i32) {
    %c0_i32 = arith.constant 0 : i32
    %c0_i32_0 = arith.constant 0 : i32
    %c0_i32_1 = arith.constant 0 : i32
    return %c0_i32, %arg0, %c0_i32_0 : i32, i32, i32
  }
}

</mosaic_0001>

<bundles_post_ra>
// kernel: tpu_custom_call.1
= control target key start
LH: loop header
LB: loop body
LE: loop exit
PB: predicated region body
PF: predicated region fallthrough
CT: control target
= control target key end

     0   :  { %s1357_s24 = smov [#allocation3]   ;;  %s2070_s0 = inlined_call_operand.hbm [shape: s32[3], index: 0, kind: input, shape index: {}]   ;;  %s2071_s1 = inlined_call_operand.hbm [shape: f32[3,128,128], index: 1, kind: input, shape index: {}]   ;;  %s2072_s2 = inlined_call_operand.hbm [shape: s32[1,128,128], index: 2, kind: input, shape index: {}]   ;;  %s2073_s3 = inlined_call_operand.hbm [shape: f32[3,128,128], index: 3, kind: input, shape index: {}]   ;;  %s2074_s4 = inlined_call_operand.hbm [shape: s32[1,128,128], index: 4, kind: input, shape index: {}]   ;;  %s2075_s5 = inlined_call_operand.hbm [shape: f32[3,128,128], index: 5, kind: output, shape index: {0}]   ;;  %s2076_s6 = inlined_call_operand.hbm [shape: s32[1,128,128], index: 6, kind: output, shape index: {1}]  }
   0x1   :  { %2096 = sst [smem:[#allocation41_spill]] %s2071_s1  ;;  %s13_s23 = sshll.u32 %s2070_s0, 4  ;;  %s14_s23 = int_to_ptr.hbm [resolvable:$true] %s13_s23 }
   0x2   :  { %2097 = sst [smem:[#allocation42_spill]] %s2075_s5 }
   0x3   :  { %2098 = sst [smem:[#allocation43_spill]] %s2076_s6 }
   0x4   :  { %16 = dma.hbm_to_smem %s14_s23, 16, %s1357_s24, [#allocation2] }
   0x5   :  { %1291 = dma.done.wait [#allocation2], 16 }
   0x6   :  { %1292 = vsyncadd [#allocation2], 4294967280 }
   0x7   :  { %19 = sfence }
   0x8   :  { %20 = vsyncpa [#allocation5], 0 }
   0x9   :  { %22 = vsyncpa [#allocation5 + $0x1], 0 }
   0xa   :  { %23 = vsyncpa [#allocation8], 0 }
   0xb   :  { %25 = vsyncpa [#allocation8 + $0x1], 0 }
   0xc   :  { %26 = vsyncpa [#allocation11], 0 }
   0xd   :  { %28 = vsyncpa [#allocation11 + $0x1], 0 }
   0xe   :  { %29 = vsyncpa [#allocation6], 0 }
   0xf   :  { %31 = vsyncpa [#allocation6 + $0x1], 0 }
  0x10   :  { %32 = vsyncpa [#allocation14], 0 }
  0x11   :  { %34 = vsyncpa [#allocation14 + $0x1], 0  ;;  %s1416_s25 = smov 0   ;;  %s1418_s26 = smov 0  }
  0x12   :  { %s1420_s0 = smov 0   ;;  %s1422_s27 = smov 0  }
  0x13   :  { %s1424_s28 = smov 0   ;;  %s1426_s29 = smov 0  }
  0x14   :  { %s1428_s30 = smov 0   ;;  %s1430_s7 = smov 0  }
  0x15   :  { %s1432_s8 = smov 0   ;;  %s1434_s9 = smov 0  }
  0x16 LB: > { %2099 = sst [smem:[#allocation30_spill]] %s1323_s26  ;;  %s1465_s10 = sadd.s32 4294967295, %s1355_s9   ;;  %s1355_s9 = sphi %s1434_s9, %s2134_s9   ;;  %s1351_s8 = sphi %s1432_s8, %s2139_s8   ;;  %s1347_s7 = sphi %s1430_s7, %s2146_s7   ;;  %s1343_s30 = sphi %s1428_s30, %s2145_s30   ;;  %s1339_s29 = sphi %s1426_s29, %s2144_s29   ;;  %s1335_s28 = sphi %s1424_s28, %s2143_s28   ;;  %s1331_s27 = sphi %s1422_s27, %s2142_s27   ;;  %s1327_s0 = sphi %s1420_s0, %s2141_s0   ;;  %s1323_s26 = sphi %s1418_s26, %s2140_s26   ;;  %s1319_s25 = sphi %s1416_s25, %s2135_s25  }
  0x17   : > { %2100 = sst [smem:[#allocation31_spill]] %s1343_s30  ;;  %s1468_s11 = sadd.s32 1, %s1355_s9  }
  0x18   : > { %2101 = sst [smem:[#allocation32_spill]] %s1351_s8  ;;  %s47_s12 = sadd.s32 1, %s1351_s8 }
  0x19   : > { %2102 = sst [smem:[#allocation33_spill]] %s1468_s11  ;;  %s44_s13 = ssub.s32 %s1355_s9, %s1468_s11 }
  0x1a   : > { %p2078_p0 = scmp.ne.s32.totalorder %s1351_s8, %s1347_s7  ;;  %p45_p1 = scmp.eq.s32.totalorder %s44_s13, 0 }
  0x1b   : > { %p55_p2 = scmp.eq.s32.totalorder %s1355_s9, 0  ;;  %p2077_p3 = scmp.ne.s32.totalorder %s1347_s7, %s1343_s30 }
  0x1c   : > { %p61_p4 = scmp.eq.s32.totalorder %s1465_s10, 0  ;;  %s963_s17 = sld [smem:[#allocation3 + $0x1]] }
  0x1d   : > { %s1480_s14 = scalar_select %p45_p1, %s1351_s8, %s47_s12  }
  0x1e   : > { %p1487_p5 = por %p55_p2, %p2078_p0  ;;  %p1496_p6 = por %p61_p4, %p2077_p3 }
  0x1f   : > { %2103 = sst [smem:[#allocation34_spill]] %s1480_s14  ;;  %s962_s18 = sadd.s32 4294967294, %s1355_s9  }
  0x20   : > { %s2105_s16 = scalar_select %p1496_p6, 1, 0 }
  0x21   : > { %p118_p7 = scmp.ne.s32.totalorder %s1339_s29, %s1335_s28  ;;  %s964_s19 = sld [smem:[#allocation3 + $0x2]] }
  0x22   : > { %p124_p8 = scmp.ne.s32.totalorder %s1335_s28, %s1331_s27  ;;  %p156_p10 = scmp.ne.s32.totalorder %s1327_s0, %s1323_s26 }
  0x23   : > { %p1506_p9 = por %p118_p7, %p55_p2  ;;  %p162_p12 = scmp.ne.s32.totalorder %s1323_s26, %s1319_s25 }
  0x24   : > { %p1514_p11 = por %p124_p8, %p61_p4  ;;  %p1522_p13 = por %p156_p10, %p55_p2 }
  0x25   : > { %s2106_s20 = scalar_select %p1506_p9, 1, 0 }
  0x26   : > { %s2107_s21 = scalar_select %p1514_p11, 1, 0 }
  0x27   : > { %s2109_s22 = scalar_select %p1522_p13, 1, 0 }
  0x28   : > { %2108 = sst [smem:[#allocation35_spill]] %s2107_s21  ;;  %p186_p1 = scmp.eq.s32.totalorder %s1465_s10, 1 }
  0x29   : > { %p97_p7 = scmp.gt.s32.totalorder %s1355_s9, %s963_s17  ;;  %p103_p3 = scmp.gt.s32.totalorder %s1468_s11, %s963_s17 }
  0x2a   : > { %p1531_p0 = por %p162_p12, %p61_p4  ;;  %p2112_p8 = scmp.ne.s32.totalorder %s1351_s8, %s1347_s7 }
  0x2b   : > { %s98_s25 = scalar_select %p97_p7, %s1355_s9, %s963_s17 }
  0x2c   : > { %s2110_s23 = scalar_select %p1531_p0, 1, 0 }
  0x2d   : > { %p1538_p11 = por %p186_p1, %p2112_p8  ;;  %p100_p2 = scmp.lt.s32.totalorder %s98_s25, %s964_s19 }
  0x2e   : > { %2111 = sst [smem:[#allocation36_spill]] %s2110_s23  ;;  %p192_p10 = scmp.eq.s32.totalorder %s962_s18, 1 }
  0x2f   : > { %s2113_s24 = scalar_select %p1538_p11, 1, 0 }
  0x30   : > { %s104_s27 = scalar_select %p103_p3, %s1468_s11, %s963_s17 }
  0x31   : > { %2114 = sst [smem:[#allocation37_spill]] %s2113_s24  ;;  %s2148_s25 = smov (!%p100_p2, %s98_s25), %s964_s19 }
  0x32   : > { %p106_p6 = scmp.lt.s32.totalorder %s104_s27, %s964_s19  ;;  %p2115_p13 = scmp.ne.s32.totalorder %s1347_s7, %s1343_s30 }
  0x33   : > { %s111_s14 = sadd.s32 1, %s1339_s29  ;;  %s149_s6 = sadd.s32 1, %s1327_s0 }
  0x34   : > { %s2150_s27 = smov (!%p106_p6, %s104_s27), %s964_s19  ;;  %p1547_p9 = por %p192_p10, %p2115_p13 }
  0x35   : > { %s108_s13 = ssub.s32 %s2148_s25, %s2150_s27  ;;  %p972_p3 = scmp.ge.s32.totalorder %s1355_s9, 2 }
  0x36   : > { %s2116_s12 = scalar_select %p1547_p9, 1, 0 }
  0x37   : > { %p109_p4 = scmp.eq.s32.totalorder %s108_s13, 0 }
  0x38   : > { %2117 = sst [smem:[#allocation38_spill]] %s2116_s12  ;;  %234 = sbr.rel (%p972_p3) target bundleno = 136 (0x88), region = 16 }
  0x39   : > { %s1554_s5 = scalar_select %p109_p4, %s1339_s29, %s111_s14  }
  0x3a   : > { %s1557_s23 = scalar_select %p109_p4, %s1327_s0, %s149_s6  }
  0x3b   : > { %2118 = sst [smem:[#allocation39_spill]] %s1554_s5 }
  0x3c   : > { %2119 = sst [smem:[#allocation40_spill]] %s1557_s23 }
  0x3d   : > { %s1563_s17 = sand.u32 1, %s1351_s8   ;;  %s1004_s18 = sshll.u32 %s1355_s9, 6 }
  0x3e   : > { %s1010_s19 = smul.u32 192, %s1563_s17  ;;  %s2120_s1 = sld [smem:[#allocation41_spill]] }
  0x3f   : > { %s1014_s13 = scalar_select %p1487_p5, [#allocation0], [#allocation21] }
  0x40   : > { %s242_s23 = scalar_lea.vmem [#allocation4], %s1010_s19  ;;  %s1358_s8 = smov 2048  }
  0x41   : > { %s252_s5 = sld [smem:[%s1014_s13]]   ;;  %s262_s11 = sshll.u32 %s242_s23, 4  ;;  %s263_s11 = int_to_ptr.vmem [resolvable:$true] %s262_s11 }
  0x42   : > { %1015 = sst [smem:[#allocation16]] (%p1487_p5), %s1358_s8  ;;  %s1359_s12 = smov 1024  }
  0x43   : > { %1016 = sst [smem:[#allocation16 + $0x1]] (%p1487_p5), %s1359_s12  ;;  %s1360_s14 = smov 8  }
  0x44   : > { %s247_s6 = scalar_lea.hbm %s2120_s1, %s1004_s18  ;;  %1017 = sst [smem:[#allocation16 + $0x2]] (%p1487_p5), %s1360_s14 }
  0x45   : > { %s260_s27 = sshll.u32 %s247_s6, 4  ;;  %s1361_s25 = smov 128   ;;  %s261_s27 = int_to_ptr.hbm [resolvable:$true] %s260_s27 }
  0x46   : > { %1018 = sst [smem:[#allocation16 + $0x3]] (%p1487_p5), %s1361_s25  ;;  %s239_s19 = scalar_lea.sflag [#allocation5], %s1563_s17 }
  0x47   : > { %1019 = sst [smem:[#allocation16 + $0x4]] (%p1487_p5), %s1361_s25  ;;  %s975_s6 = sshll.u32 %s252_s5, 26 }
  0x48   : > { %1020 = sst [smem:[#allocation16 + $0x5]] (%p1487_p5), %s1360_s14  ;;  %s976_s23 = sadd.s32 134217728, %s975_s6 }
  0x49   : > { %s1362_s13 = smov [#allocation15]   ;;  %s285_s8 = sand.u32 1, %s1355_s9  }
  0x4a   : > { %1021 = dma.general (%p1487_p5), %s261_s27, 3072, %s263_s11, %s239_s19, %s1362_s13, [#allocation16], %s976_s23, 0  }
  0x4b   : > { %s977_s12 = sshll.u32 %s1563_s17, 6  ;;  %s294_s24 = scalar_lea.hbm %s2072_s2, %s1004_s18 }
  0x4c   : > { %s289_s26 = scalar_lea.vmem [#allocation7], %s977_s12  ;;  %s295_s25 = sshll.u32 %s294_s24, 4  ;;  %s296_s25 = int_to_ptr.hbm [resolvable:$true] %s295_s25 }
  0x4d   : > { %s297_s21 = sshll.u32 %s289_s26, 4  ;;  %s1592_s5 = scalar_lea.sflag [#allocation8], %s285_s8  ;;  %s298_s21 = int_to_ptr.vmem [resolvable:$true] %s297_s21 }
  0x4e   : > { %s1167_s14 = sshra.s32 %s296_s25, 4  ;;  %s1173_s27 = scalar_lea.hbm %s2072_s2, 128  ;;  %s1168_s14 = int_to_ptr.hbm [resolvable:$true] %s1167_s14 }
  0x4f   : > { %s1169_s6 = scalar_lea.hbm %s1168_s14, 64  ;;  %p1174_p1 = scmp.lt.s32.totalorder %s1168_s14, %s2072_s2 }
  0x50   : > { %p1170_p6 = scmp.ne.s32.totalorder %s1168_s14, %s1169_s6  ;;  %p1175_p7 = scmp.lt.s32.totalorder %s1173_s27, %s1169_s6 }
  0x52   : > { %p1171_p12 = pnand %p1170_p6, %p1487_p5  ;;  %p1176_p8 = por %p1175_p7, %p1174_p1 }
  0x54   : > { %p1172_p13 = pneg %p1171_p12 }
  0x56   : > { %p1177_p2 = pnand %p1176_p8, %p1172_p13 }
  0x58   : > { %1180 = shalt.err (!%p1177_p2)
}
  0x59   : > { %s1363_s26 = smov 128   ;;  %s1364_s24 = smov 8  }
  0x5a   : > { %1022 = dma.hbm_to_vmem [thread:$0]  (%p1487_p5), %s296_s25, 1024, %s298_s21, %s1592_s5, %s1363_s26, %s1363_s26, %s1364_s24  }
  0x5b   : > { %s309_s18 = sand.u32 1, %s1339_s29   ;;  %s980_s23 = sld [smem:[#allocation3 + $0x1]] }
  0x5c   : > { %s1011_s19 = smul.u32 192, %s309_s18  ;;  %s981_s13 = sld [smem:[#allocation3 + $0x2]] }
  0x5d   : > { %p2121_p10 = scmp.ne.s32.totalorder %s2106_s20, 0  ;;  %s1365_s6 = smov 2048  }
  0x5e   : > { %s311_s15 = scalar_lea.vmem [#allocation9], %s1011_s19  ;;  %s1366_s21 = smov 1024  }
  0x5f   : > { %s1023_s8 = scalar_select %p2121_p10, [#allocation0], [#allocation22] }
  0x60   : > { %s337_s14 = sshll.u32 %s311_s15, 4  ;;  %1024 = sst [smem:[#allocation18]] (%p2121_p10), %s1365_s6  ;;  %s338_s14 = int_to_ptr.vmem [resolvable:$true] %s337_s14 }
  0x61   : > { %s327_s12 = sld [smem:[%s1023_s8]]   ;;  %p313_p5 = scmp.gt.s32.totalorder %s1355_s9, %s980_s23 }
  0x62   : > { %1025 = sst [smem:[#allocation18 + $0x1]] (%p2121_p10), %s1366_s21  ;;  %s1367_s11 = smov 8  }
  0x63   : > { %s314_s25 = scalar_select %p313_p5, %s1355_s9, %s980_s23 }
  0x64   : > { %1026 = sst [smem:[#allocation18 + $0x2]] (%p2121_p10), %s1367_s11  ;;  %s1368_s27 = smov 128  }
  0x65   : > { %p316_p4 = scmp.lt.s32.totalorder %s314_s25, %s981_s13  ;;  %1027 = sst [smem:[#allocation18 + $0x3]] (%p2121_p10), %s1368_s27 }
  0x66   : > { %1028 = sst [smem:[#allocation18 + $0x4]] (%p2121_p10), %s1368_s27  ;;  %s1369_s15 = smov [#allocation17]  }
  0x67   : > { %s984_s17 = sshll.u32 %s327_s12, 26  ;;  %s2152_s25 = smov (!%p316_p4, %s314_s25), %s981_s13 }
  0x68   : > { %s985_s1 = sadd.s32 134217728, %s984_s17  ;;  %s1006_s30 = sshll.u32 %s2152_s25, 6 }
  0x69   : > { %1029 = sst [smem:[#allocation18 + $0x5]] (%p2121_p10), %s1367_s11  ;;  %s322_s19 = scalar_lea.hbm %s2073_s3, %s1006_s30 }
  0x6a   : > { %s335_s8 = sshll.u32 %s322_s19, 4  ;;  %s360_s13 = sand.u32 1, %s1327_s0   ;;  %s336_s8 = int_to_ptr.hbm [resolvable:$true] %s335_s8 }
  0x6b   : > { %1030 = dma.general (%p2121_p10), %s336_s8, 3072, %s338_s14, %s1592_s5, %s1369_s15, [#allocation18], %s985_s1, 0  }
  0x6c   : > { %s987_s12 = sld [smem:[#allocation3 + $0x1]]  ;;  %s986_s21 = sshll.u32 %s360_s13, 6 }
  0x6d   : > { %s988_s6 = sld [smem:[#allocation3 + $0x2]]  ;;  %s364_s11 = scalar_lea.vmem [#allocation10], %s986_s21 }
  0x6e   : > { %s378_s17 = sshll.u32 %s364_s11, 4  ;;  %s361_s14 = scalar_lea.sflag [#allocation11], %s360_s13  ;;  %s379_s17 = int_to_ptr.vmem [resolvable:$true] %s378_s17 }
  0x6f   : > { %p2122_p1 = scmp.ne.s32.totalorder %s2109_s22, 0  ;;  %s1201_s15 = scalar_lea.hbm %s2074_s4, 128 }
  0x72   : > { %p366_p6 = scmp.gt.s32.totalorder %s1355_s9, %s987_s12 }
  0x74   : > { %s367_s25 = scalar_select %p366_p6, %s1355_s9, %s987_s12 }
  0x76   : > { %p369_p12 = scmp.lt.s32.totalorder %s367_s25, %s988_s6 }
  0x78   : > { %s2154_s25 = smov (!%p369_p12, %s367_s25), %s988_s6 }
  0x79   : > { %s1007_s27 = sshll.u32 %s2154_s25, 6 }
  0x7a   : > { %s375_s20 = scalar_lea.hbm %s2074_s4, %s1007_s27 }
  0x7b   : > { %s376_s5 = sshll.u32 %s375_s20, 4  ;;  %s377_s5 = int_to_ptr.hbm [resolvable:$true] %s376_s5 }
  0x7c   : > { %s1195_s1 = sshra.s32 %s377_s5, 4  ;;  %s1196_s1 = int_to_ptr.hbm [resolvable:$true] %s1195_s1 }
  0x7d   : > { %s1197_s23 = scalar_lea.hbm %s1196_s1, 64  ;;  %p1202_p2 = scmp.lt.s32.totalorder %s1196_s1, %s2074_s4 }
  0x7e   : > { %p1198_p13 = scmp.ne.s32.totalorder %s1196_s1, %s1197_s23  ;;  %p1203_p10 = scmp.lt.s32.totalorder %s1201_s15, %s1197_s23 }
  0x80   : > { %p1199_p7 = pnand %p1198_p13, %p2122_p1  ;;  %p1204_p5 = por %p1203_p10, %p1202_p2 }
  0x82   : > { %p1200_p8 = pneg %p1199_p7 }
  0x84   : > { %p1205_p4 = pnand %p1204_p5, %p1200_p8 }
  0x86   : > { %1208 = shalt.err (!%p1205_p4)
}
  0x87   : > { %1031 = dma.hbm_to_vmem [thread:$0]  (%p2122_p1), %s377_s5, 1024, %s379_s17, %s361_s14, %s1363_s26, %s1363_s26, %s1364_s24  }
  0x88 PF: > { %p991_p6 = scmp.ge.s32.totalorder %s1355_s9, 1  ;;  %p386_p12 = scmp.lt.s32.totalorder %s1355_s9, 3 }
  0x8a   : > { %p387_p13 = pnand %p991_p6, %p386_p12 }
  0x8b   : > { %s1653_s13 = sand.u32 (!%p387_p13), 1, %s1347_s7   ;;  %p2123_p7 = scmp.ne.s32.totalorder (!%p387_p13), %s2105_s16, 0 }
  0x8c   : > { %390 = sbr.rel (%p387_p13) target bundleno = 286 (0x11e), region = 36  ;;  %s393_s25 = scalar_lea.sflag (!%p387_p13), [#allocation5], %s1653_s13 }
  0x8d   : > { %s1012_s21 = smul.u32 (!%p387_p13), 192, %s1653_s13 }
  0x8f   : > { %s1657_s22 = scalar_lea.vmem (!%p387_p13), [#allocation4], %s1012_s21 }
  0x91   : > { %1294 = dma.done.wait (%p2123_p7), %s393_s25, 3072  }
  0x92   : > { %1296 = vsyncadd (%p2123_p7), %s393_s25, 4294964224  ;;  %s402_s26 = sand.u32 1, %s1465_s10   ;;  %s992_s24 = sshll.u32 %s1653_s13, 6 }
  0x93   : > { %s403_s11 = scalar_lea.sflag [#allocation8], %s402_s26  ;;  %s1665_s17 = scalar_lea.vmem [#allocation7], %s992_s24 }
  0x94   : > { %1298 = dma.done.wait (%p2123_p7), %s403_s11, 1024  }
  0x95   : > { %1300 = vsyncadd (%p2123_p7), %s403_s11, 4294966272  ;;  %s2124_s27 = sld [smem:[#allocation35_spill]]  ;;  %s414_s30 = sand.u32 1, %s1335_s28  }
  0x96   : > { %s1013_s18 = smul.u32 192, %s414_s30 }
  0x98   : > { %s1672_s20 = scalar_lea.vmem [#allocation9], %s1013_s18 }
  0x9b   : > { %p2125_p1 = scmp.ne.s32.totalorder %s2124_s27, 0 }
  0x9d   : > { %1302 = dma.done.wait (%p2125_p1), %s403_s11, 3072  }
  0x9e   : > { %1304 = vsyncadd (%p2125_p1), %s403_s11, 4294964224  ;;  %s2126_s5 = sld [smem:[#allocation30_spill]] }
  0xa4   : > { %s422_s1 = sand.u32 1, %s2126_s5  }
  0xa5   : > { %s993_s23 = sshll.u32 %s422_s1, 6  ;;  %s423_s19 = scalar_lea.sflag [#allocation11], %s422_s1 }
  0xa6   : > { %s1679_s8 = scalar_lea.vmem [#allocation10], %s993_s23 }
  0xa7   : > { %1306 = dma.done.wait (%p1531_p0), %s423_s19, 1024  }
  0xa8   : > { %1308 = vsyncadd (%p1531_p0), %s423_s19, 4294966272  ;;  %s492_s16 = sld [smem:[#allocation3]]  ;;  %s1691_s25 = scalar_lea.vmem [#allocation12], %s1012_s21 }
  0xa9   : > { %s995_s15 = sld [smem:[#allocation3 + $0x1]]  ;;  %s1693_s26 = scalar_lea.vmem [#allocation13], %s992_s24 }
  0xaa   : > { %s996_s12 = sld [smem:[#allocation3 + $0x2]] }
  0xaf   : > { %p494_p8 = scmp.ge.s32.totalorder %s1465_s10, %s995_s15 }
  0xb0   : > { %p496_p2 = scmp.le.s32.totalorder %s1465_s10, %s996_s12 }
  0xb2   : > { %p1687_p10 = pnand %p496_p2, %p494_p8 }
  0xb4   : > { %500 = sbr.rel (%p1687_p10) target bundleno = 221 (0xdd), region = 56 }
  0xb9   : > { %v1698_v0 = vld [vmem:[%s1679_s8] sm:$0xff]  ;;  %v1700_v1 = vstv %s492_s16  ;;  %v1707_v4 = vld [vmem:[%s1679_s8 + $0x8] sm:$0xff]  ;;  %v1717_v8 = vld [vmem:[%s1679_s8 + $0x10] sm:$0xff] }
  0xba   : > { %v518_v2 = vld [vmem:[%s1672_s20] sm:$0xff]  ;;  %vm510_vm0 = vcmp.eq.s32.totalorder %v1698_v0, %v1700_v1  ;;  %v519_v5 = vld [vmem:[%s1672_s20 + $0x8] sm:$0xff]  ;;  %vm511_vm1 = vcmp.eq.s32.totalorder %v1707_v4, %v1700_v1  ;;  %v520_v9 = vld [vmem:[%s1672_s20 + $0x10] sm:$0xff]  ;;  %vm512_vm2 = vcmp.eq.s32.totalorder %v1717_v8, %v1700_v1 }
  0xbb   : > { %v542_v3 = vld [vmem:[%s1657_s22] sm:$0xff]  ;;  %v543_v6 = vld [vmem:[%s1657_s22 + $0x8] sm:$0xff]  ;;  %v544_v10 = vld [vmem:[%s1657_s22 + $0x10] sm:$0xff] }
  0xbc   : > { %v582_v7 = vsel %vm510_vm0, %v518_v2, %v542_v3  ;;  %v583_v11 = vsel %vm511_vm1, %v519_v5, %v543_v6  ;;  %v1728_v12 = vld [vmem:[%s1679_s8 + $0x18] sm:$0xff]  ;;  %v584_v15 = vsel %vm512_vm2, %v520_v9, %v544_v10  ;;  %v1739_v16 = vld [vmem:[%s1679_s8 + $0x20] sm:$0xff]  ;;  %v1750_v20 = vld [vmem:[%s1679_s8 + $0x28] sm:$0xff] }
  0xbd   : > { %606 = vst [vmem:[%s1691_s25] sm:$0xff] %v582_v7  ;;  %v521_v13 = vld [vmem:[%s1672_s20 + $0x18] sm:$0xff]  ;;  %vm513_vm3 = vcmp.eq.s32.totalorder %v1728_v12, %v1700_v1  ;;  %v522_v17 = vld [vmem:[%s1672_s20 + $0x20] sm:$0xff]  ;;  %vm514_vm4 = vcmp.eq.s32.totalorder %v1739_v16, %v1700_v1  ;;  %v523_v21 = vld [vmem:[%s1672_s20 + $0x28] sm:$0xff]  ;;  %vm515_vm5 = vcmp.eq.s32.totalorder %v1750_v20, %v1700_v1 }
  0xbe   : > { %v545_v14 = vld [vmem:[%s1657_s22 + $0x18] sm:$0xff]  ;;  %607 = vst [vmem:[%s1691_s25 + $0x8] sm:$0xff] %v583_v11  ;;  %v546_v18 = vld [vmem:[%s1657_s22 + $0x20] sm:$0xff]  ;;  %v547_v22 = vld [vmem:[%s1657_s22 + $0x28] sm:$0xff] }
  0xbf   : > { %608 = vst [vmem:[%s1691_s25 + $0x10] sm:$0xff] %v584_v15  ;;  %v585_v19 = vsel %vm513_vm3, %v521_v13, %v545_v14  ;;  %v586_v23 = vsel %vm514_vm4, %v522_v17, %v546_v18  ;;  %v1761_v24 = vld [vmem:[%s1679_s8 + $0x30] sm:$0xff]  ;;  %v587_v27 = vsel %vm515_vm5, %v523_v21, %v547_v22  ;;  %v1772_v28 = vld [vmem:[%s1679_s8 + $0x38] sm:$0xff]  ;;  %v526_v32 = vld [vmem:[%s1672_s20 + $0x40] sm:$0xff] }
  0xc0   : > { %609 = vst [vmem:[%s1691_s25 + $0x18] sm:$0xff] %v585_v19  ;;  %v524_v25 = vld [vmem:[%s1672_s20 + $0x30] sm:$0xff]  ;;  %vm516_vm6 = vcmp.eq.s32.totalorder %v1761_v24, %v1700_v1  ;;  %v525_v29 = vld [vmem:[%s1672_s20 + $0x38] sm:$0xff]  ;;  %vm517_vm7 = vcmp.eq.s32.totalorder %v1772_v28, %v1700_v1  ;;  %v550_v33 = vld [vmem:[%s1657_s22 + $0x40] sm:$0xff] }
  0xc1   : > { %v548_v26 = vld [vmem:[%s1657_s22 + $0x30] sm:$0xff]  ;;  %610 = vst [vmem:[%s1691_s25 + $0x20] sm:$0xff] %v586_v23  ;;  %v549_v30 = vld [vmem:[%s1657_s22 + $0x38] sm:$0xff]  ;;  %v527_v34 = vld [vmem:[%s1672_s20 + $0x48] sm:$0xff]  ;;  %v590_v36 = vsel %vm510_vm0, %v526_v32, %v550_v33 }
  0xc2   : > { %611 = vst [vmem:[%s1691_s25 + $0x28] sm:$0xff] %v587_v27  ;;  %v588_v31 = vsel %vm516_vm6, %v524_v25, %v548_v26  ;;  %v589_v35 = vsel %vm517_vm7, %v525_v29, %v549_v30  ;;  %v551_v37 = vld [vmem:[%s1657_s22 + $0x48] sm:$0xff]  ;;  %v528_v38 = vld [vmem:[%s1672_s20 + $0x50] sm:$0xff]  ;;  %v529_v42 = vld [vmem:[%s1672_s20 + $0x58] sm:$0xff] }
  0xc3   : > { %612 = vst [vmem:[%s1691_s25 + $0x30] sm:$0xff] %v588_v31  ;;  %v552_v39 = vld [vmem:[%s1657_s22 + $0x50] sm:$0xff]  ;;  %v591_v40 = vsel %vm511_vm1, %v527_v34, %v551_v37  ;;  %v553_v43 = vld [vmem:[%s1657_s22 + $0x58] sm:$0xff]  ;;  %v530_v44 = vld [vmem:[%s1672_s20 + $0x60] sm:$0xff] }
  0xc4   : > { %613 = vst [vmem:[%s1691_s25 + $0x38] sm:$0xff] %v589_v35  ;;  %v592_v41 = vsel %vm512_vm2, %v528_v38, %v552_v39  ;;  %v593_v45 = vsel %vm513_vm3, %v529_v42, %v553_v43  ;;  %v554_v46 = vld [vmem:[%s1657_s22 + $0x60] sm:$0xff]  ;;  %v531_v47 = vld [vmem:[%s1672_s20 + $0x68] sm:$0xff]  ;;  %v532_v50 = vld [vmem:[%s1672_s20 + $0x70] sm:$0xff] }
  0xc5   : > { %614 = vst [vmem:[%s1691_s25 + $0x40] sm:$0xff] %v590_v36  ;;  %v555_v48 = vld [vmem:[%s1657_s22 + $0x68] sm:$0xff]  ;;  %v594_v49 = vsel %vm514_vm4, %v530_v44, %v554_v46  ;;  %v556_v51 = vld [vmem:[%s1657_s22 + $0x70] sm:$0xff]  ;;  %v533_v52 = vld [vmem:[%s1672_s20 + $0x78] sm:$0xff] }
  0xc6   : > { %615 = vst [vmem:[%s1691_s25 + $0x48] sm:$0xff] %v591_v40  ;;  %v595_v53 = vsel %vm515_vm5, %v531_v47, %v555_v48  ;;  %v557_v54 = vld [vmem:[%s1657_s22 + $0x78] sm:$0xff]  ;;  %v534_v55 = vld [vmem:[%s1672_s20 + $0x80] sm:$0xff]  ;;  %v596_v57 = vsel %vm516_vm6, %v532_v50, %v556_v51  ;;  %v535_v58 = vld [vmem:[%s1672_s20 + $0x88] sm:$0xff] }
  0xc7   : > { %616 = vst [vmem:[%s1691_s25 + $0x50] sm:$0xff] %v592_v41  ;;  %v558_v56 = vld [vmem:[%s1657_s22 + $0x80] sm:$0xff]  ;;  %v559_v59 = vld [vmem:[%s1657_s22 + $0x88] sm:$0xff]  ;;  %v597_v60 = vsel %vm517_vm7, %v533_v52, %v557_v54  ;;  %v536_v61 = vld [vmem:[%s1672_s20 + $0x90] sm:$0xff] }
  0xc8   : > { %617 = vst [vmem:[%s1691_s25 + $0x58] sm:$0xff] %v593_v45  ;;  %v560_v62 = vld [vmem:[%s1657_s22 + $0x90] sm:$0xff]  ;;  %v598_v63 = vsel %vm510_vm0, %v534_v55, %v558_v56  ;;  %v537_v2 = vld [vmem:[%s1672_s20 + $0x98] sm:$0xff]  ;;  %v599_v5 = vsel %vm511_vm1, %v535_v58, %v559_v59  ;;  %v538_v6 = vld [vmem:[%s1672_s20 + $0xa0] sm:$0xff] }
  0xc9   : > { %618 = vst [vmem:[%s1691_s25 + $0x60] sm:$0xff] %v594_v49  ;;  %v561_v3 = vld [vmem:[%s1657_s22 + $0x98] sm:$0xff]  ;;  %v562_v7 = vld [vmem:[%s1657_s22 + $0xa0] sm:$0xff]  ;;  %v600_v9 = vsel %vm512_vm2, %v536_v61, %v560_v62  ;;  %v539_v10 = vld [vmem:[%s1672_s20 + $0xa8] sm:$0xff] }
  0xca   : > { %619 = vst [vmem:[%s1691_s25 + $0x68] sm:$0xff] %v595_v53  ;;  %v563_v11 = vld [vmem:[%s1657_s22 + $0xa8] sm:$0xff]  ;;  %v601_v13 = vsel %vm513_vm3, %v537_v2, %v561_v3  ;;  %v540_v14 = vld [vmem:[%s1672_s20 + $0xb0] sm:$0xff]  ;;  %v602_v17 = vsel %vm514_vm4, %v538_v6, %v562_v7  ;;  %v541_v18 = vld [vmem:[%s1672_s20 + $0xb8] sm:$0xff] }
  0xcb   : > { %620 = vst [vmem:[%s1691_s25 + $0x70] sm:$0xff] %v596_v57  ;;  %v564_v15 = vld [vmem:[%s1657_s22 + $0xb0] sm:$0xff]  ;;  %v565_v19 = vld [vmem:[%s1657_s22 + $0xb8] sm:$0xff]  ;;  %v603_v21 = vsel %vm515_vm5, %v539_v10, %v563_v11  ;;  %v638_v22 = vld [vmem:[%s1665_s17] sm:$0xff] }
  0xcc   : > { %621 = vst [vmem:[%s1691_s25 + $0x78] sm:$0xff] %v597_v60  ;;  %v604_v23 = vsel %vm516_vm6, %v540_v14, %v564_v15  ;;  %v639_v25 = vld [vmem:[%s1665_s17 + $0x8] sm:$0xff]  ;;  %v605_v26 = vsel %vm517_vm7, %v541_v18, %v565_v19  ;;  %v640_v27 = vld [vmem:[%s1665_s17 + $0x10] sm:$0xff]  ;;  %v646_v29 = vsel %vm510_vm0, %v1698_v0, %v638_v22  ;;  %v641_v30 = vld [vmem:[%s1665_s17 + $0x18] sm:$0xff] }
  0xcd   : > { %622 = vst [vmem:[%s1691_s25 + $0x80] sm:$0xff] %v598_v63  ;;  %v647_v31 = vsel %vm511_vm1, %v1707_v4, %v639_v25  ;;  %v642_v32 = vld [vmem:[%s1665_s17 + $0x20] sm:$0xff]  ;;  %v648_v33 = vsel %vm512_vm2, %v1717_v8, %v640_v27  ;;  %v643_v0 = vld [vmem:[%s1665_s17 + $0x28] sm:$0xff]  ;;  %v649_v34 = vsel %vm513_vm3, %v1728_v12, %v641_v30  ;;  %v644_v35 = vld [vmem:[%s1665_s17 + $0x30] sm:$0xff] }
  0xce   : > { %623 = vst [vmem:[%s1691_s25 + $0x88] sm:$0xff] %v599_v5  ;;  %v650_v4 = vsel %vm514_vm4, %v1739_v16, %v642_v32  ;;  %v645_v36 = vld [vmem:[%s1665_s17 + $0x38] sm:$0xff]  ;;  %v651_v8 = vsel %vm515_vm5, %v1750_v20, %v643_v0  ;;  %v652_v12 = vsel %vm516_vm6, %v1761_v24, %v644_v35 }
  0xcf   : > { %624 = vst [vmem:[%s1691_s25 + $0x90] sm:$0xff] %v600_v9  ;;  %v653_v37 = vsel %vm517_vm7, %v1772_v28, %v645_v36 }
  0xd0   : > { %625 = vst [vmem:[%s1691_s25 + $0x98] sm:$0xff] %v601_v13 }
  0xd1   : > { %626 = vst [vmem:[%s1691_s25 + $0xa0] sm:$0xff] %v602_v17 }
  0xd2   : > { %627 = vst [vmem:[%s1691_s25 + $0xa8] sm:$0xff] %v603_v21 }
  0xd3   : > { %628 = vst [vmem:[%s1691_s25 + $0xb0] sm:$0xff] %v604_v23 }
  0xd4   : > { %629 = vst [vmem:[%s1691_s25 + $0xb8] sm:$0xff] %v605_v26 }
  0xd5   : > { %654 = vst [vmem:[%s1693_s26] sm:$0xff] %v646_v29 }
  0xd6   : > { %655 = vst [vmem:[%s1693_s26 + $0x8] sm:$0xff] %v647_v31 }
  0xd7   : > { %656 = vst [vmem:[%s1693_s26 + $0x10] sm:$0xff] %v648_v33 }
  0xd8   : > { %657 = vst [vmem:[%s1693_s26 + $0x18] sm:$0xff] %v649_v34 }
  0xd9   : > { %658 = vst [vmem:[%s1693_s26 + $0x20] sm:$0xff] %v650_v4 }
  0xda   : > { %659 = vst [vmem:[%s1693_s26 + $0x28] sm:$0xff] %v651_v8 }
  0xdb   : > { %660 = vst [vmem:[%s1693_s26 + $0x30] sm:$0xff] %v652_v12 }
  0xdc   : > { %661 = vst [vmem:[%s1693_s26 + $0x38] sm:$0xff] %v653_v37 }
  0xdd PF: > { %664 = sbr.rel (!%p1687_p10) target bundleno = 254 (0xfe), region = 60  ;;  %v665_v1 = vld [vmem:[%s1657_s22] sm:$0xff] (%p1687_p10)  ;;  %v666_v16 = vld [vmem:[%s1657_s22 + $0x8] sm:$0xff] (%p1687_p10)  ;;  %v667_v20 = vld [vmem:[%s1657_s22 + $0x10] sm:$0xff] (%p1687_p10) }
  0xde   : > { %689 = vst [vmem:[%s1691_s25] sm:$0xff] (%p1687_p10), %v665_v1  ;;  %v668_v24 = vld [vmem:[%s1657_s22 + $0x18] sm:$0xff] (%p1687_p10)  ;;  %v669_v28 = vld [vmem:[%s1657_s22 + $0x20] sm:$0xff] (%p1687_p10)  ;;  %v670_v38 = vld [vmem:[%s1657_s22 + $0x28] sm:$0xff] (%p1687_p10) }
  0xdf   : > { %690 = vst [vmem:[%s1691_s25 + $0x8] sm:$0xff] (%p1687_p10), %v666_v16  ;;  %v671_v39 = vld [vmem:[%s1657_s22 + $0x30] sm:$0xff] (%p1687_p10)  ;;  %v672_v40 = vld [vmem:[%s1657_s22 + $0x38] sm:$0xff] (%p1687_p10)  ;;  %v673_v41 = vld [vmem:[%s1657_s22 + $0x40] sm:$0xff] (%p1687_p10) }
  0xe0   : > { %691 = vst [vmem:[%s1691_s25 + $0x10] sm:$0xff] (%p1687_p10), %v667_v20  ;;  %v674_v42 = vld [vmem:[%s1657_s22 + $0x48] sm:$0xff] (%p1687_p10)  ;;  %v675_v43 = vld [vmem:[%s1657_s22 + $0x50] sm:$0xff] (%p1687_p10)  ;;  %v676_v44 = vld [vmem:[%s1657_s22 + $0x58] sm:$0xff] (%p1687_p10) }
  0xe1   : > { %692 = vst [vmem:[%s1691_s25 + $0x18] sm:$0xff] (%p1687_p10), %v668_v24  ;;  %v677_v45 = vld [vmem:[%s1657_s22 + $0x60] sm:$0xff] (%p1687_p10)  ;;  %v678_v46 = vld [vmem:[%s1657_s22 + $0x68] sm:$0xff] (%p1687_p10)  ;;  %v679_v47 = vld [vmem:[%s1657_s22 + $0x70] sm:$0xff] (%p1687_p10) }
  0xe2   : > { %693 = vst [vmem:[%s1691_s25 + $0x20] sm:$0xff] %v669_v28  ;;  %v680_v48 = vld [vmem:[%s1657_s22 + $0x78] sm:$0xff]  ;;  %v681_v49 = vld [vmem:[%s1657_s22 + $0x80] sm:$0xff]  ;;  %v682_v50 = vld [vmem:[%s1657_s22 + $0x88] sm:$0xff] }
  0xe3   : > { %694 = vst [vmem:[%s1691_s25 + $0x28] sm:$0xff] %v670_v38  ;;  %v683_v51 = vld [vmem:[%s1657_s22 + $0x90] sm:$0xff]  ;;  %v684_v52 = vld [vmem:[%s1657_s22 + $0x98] sm:$0xff]  ;;  %v685_v53 = vld [vmem:[%s1657_s22 + $0xa0] sm:$0xff] }
  0xe4   : > { %695 = vst [vmem:[%s1691_s25 + $0x30] sm:$0xff] %v671_v39  ;;  %v686_v54 = vld [vmem:[%s1657_s22 + $0xa8] sm:$0xff]  ;;  %v687_v55 = vld [vmem:[%s1657_s22 + $0xb0] sm:$0xff]  ;;  %v688_v56 = vld [vmem:[%s1657_s22 + $0xb8] sm:$0xff] }
  0xe5   : > { %696 = vst [vmem:[%s1691_s25 + $0x38] sm:$0xff] %v672_v40  ;;  %v713_v57 = vld [vmem:[%s1665_s17] sm:$0xff]  ;;  %v714_v58 = vld [vmem:[%s1665_s17 + $0x8] sm:$0xff]  ;;  %v715_v59 = vld [vmem:[%s1665_s17 + $0x10] sm:$0xff] }
  0xe6   : > { %697 = vst [vmem:[%s1691_s25 + $0x40] sm:$0xff] %v673_v41  ;;  %v716_v60 = vld [vmem:[%s1665_s17 + $0x18] sm:$0xff]  ;;  %v717_v61 = vld [vmem:[%s1665_s17 + $0x20] sm:$0xff]  ;;  %v718_v62 = vld [vmem:[%s1665_s17 + $0x28] sm:$0xff] }
  0xe7   : > { %698 = vst [vmem:[%s1691_s25 + $0x48] sm:$0xff] %v674_v42  ;;  %v719_v63 = vld [vmem:[%s1665_s17 + $0x30] sm:$0xff]  ;;  %v720_v2 = vld [vmem:[%s1665_s17 + $0x38] sm:$0xff] }
  0xe8   : > { %699 = vst [vmem:[%s1691_s25 + $0x50] sm:$0xff] %v675_v43 }
  0xe9   : > { %700 = vst [vmem:[%s1691_s25 + $0x58] sm:$0xff] %v676_v44 }
  0xea   : > { %701 = vst [vmem:[%s1691_s25 + $0x60] sm:$0xff] %v677_v45 }
  0xeb   : > { %702 = vst [vmem:[%s1691_s25 + $0x68] sm:$0xff] %v678_v46 }
  0xec   : > { %703 = vst [vmem:[%s1691_s25 + $0x70] sm:$0xff] %v679_v47 }
  0xed   : > { %704 = vst [vmem:[%s1691_s25 + $0x78] sm:$0xff] %v680_v48 }
  0xee   : > { %705 = vst [vmem:[%s1691_s25 + $0x80] sm:$0xff] %v681_v49 }
  0xef   : > { %706 = vst [vmem:[%s1691_s25 + $0x88] sm:$0xff] %v682_v50 }
  0xf0   : > { %707 = vst [vmem:[%s1691_s25 + $0x90] sm:$0xff] %v683_v51 }
  0xf1   : > { %708 = vst [vmem:[%s1691_s25 + $0x98] sm:$0xff] %v684_v52 }
  0xf2   : > { %709 = vst [vmem:[%s1691_s25 + $0xa0] sm:$0xff] %v685_v53 }
  0xf3   : > { %710 = vst [vmem:[%s1691_s25 + $0xa8] sm:$0xff] %v686_v54 }
  0xf4   : > { %711 = vst [vmem:[%s1691_s25 + $0xb0] sm:$0xff] %v687_v55 }
  0xf5   : > { %712 = vst [vmem:[%s1691_s25 + $0xb8] sm:$0xff] %v688_v56 }
  0xf6   : > { %721 = vst [vmem:[%s1693_s26] sm:$0xff] %v713_v57 }
  0xf7   : > { %722 = vst [vmem:[%s1693_s26 + $0x8] sm:$0xff] %v714_v58 }
  0xf8   : > { %723 = vst [vmem:[%s1693_s26 + $0x10] sm:$0xff] %v715_v59 }
  0xf9   : > { %724 = vst [vmem:[%s1693_s26 + $0x18] sm:$0xff] %v716_v60 }
  0xfa   : > { %725 = vst [vmem:[%s1693_s26 + $0x20] sm:$0xff] %v717_v61 }
  0xfb   : > { %726 = vst [vmem:[%s1693_s26 + $0x28] sm:$0xff] %v718_v62 }
  0xfc   : > { %727 = vst [vmem:[%s1693_s26 + $0x30] sm:$0xff] %v719_v63 }
  0xfd   : > { %728 = vst [vmem:[%s1693_s26 + $0x38] sm:$0xff] %v720_v2 }
  0xfe PF: > { %s730_s21 = scalar_lea.sflag [#allocation6], %s1653_s13  ;;  %s735_s22 = scalar_lea.sflag [#allocation14], %s1653_s13 }
  0xff   : > { %s1008_s11 = sshll.u32 %s1465_s10, 6  ;;  %s757_s27 = sshll.u32 %s1691_s25, 4  ;;  %s758_s27 = int_to_ptr.vmem [resolvable:$true] %s757_s27 }
 0x100   : > { %s2130_s18 = sld [smem:[#allocation42_spill]]  ;;  %s1370_s14 = smov 1024  }
 0x101   : > { %1036 = sst [smem:[#allocation20]] (%p1538_p11), %s1370_s14  ;;  %s1371_s1 = smov 2048  }
 0x102   : > { %1037 = sst [smem:[#allocation20 + $0x1]] (%p1538_p11), %s1371_s1  ;;  %s1372_s23 = smov 8  }
 0x103   : > { %1038 = sst [smem:[#allocation20 + $0x2]] (%p1538_p11), %s1372_s23  ;;  %s1373_s19 = smov 128  }
 0x104   : > { %1039 = sst [smem:[#allocation20 + $0x3]] (%p1538_p11), %s1373_s19  ;;  %s1374_s10 = smov [#allocation19]  }
 0x105   : > { %1040 = sst [smem:[#allocation20 + $0x4]] (%p1538_p11), %s1373_s19  ;;  %s1375_s8 = smov 0  }
 0x106   : > { %s746_s20 = scalar_lea.hbm %s2130_s18, %s1008_s11  ;;  %1041 = sst [smem:[#allocation20 + $0x5]] (%p1538_p11), %s1372_s23 }
 0x107   : > { %s759_s5 = sshll.u32 %s746_s20, 4  ;;  %s787_s25 = sshll.u32 %s1693_s26, 4  ;;  %s760_s5 = int_to_ptr.hbm [resolvable:$true] %s759_s5  ;;  %s788_s25 = int_to_ptr.vmem [resolvable:$true] %s787_s25 }
 0x108   : > { %1042 = dma.general (%p1538_p11), %s758_s27, 3072, %s760_s5, %s730_s21, %s1374_s10, [#allocation20], %s1375_s8, 0  }
 0x109   : > { %s2131_s12 = sld [smem:[#allocation43_spill]] }
 0x10f   : > { %s786_s6 = scalar_lea.hbm %s2131_s12, %s1008_s11  ;;  %s1243_s21 = scalar_lea.hbm %s2131_s12, 128 }
 0x110   : > { %s789_s30 = sshll.u32 %s786_s6, 4  ;;  %s790_s30 = int_to_ptr.hbm [resolvable:$true] %s789_s30 }
 0x111   : > { %s1237_s17 = sshra.s32 %s790_s30, 4  ;;  %s1238_s17 = int_to_ptr.hbm [resolvable:$true] %s1237_s17 }
 0x112   : > { %s1239_s18 = scalar_lea.hbm %s1238_s17, 64  ;;  %p1244_p6 = scmp.lt.s32.totalorder %s1238_s17, %s2131_s12 }
 0x113   : > { %p1240_p0 = scmp.ne.s32.totalorder %s1238_s17, %s1239_s18  ;;  %p1245_p12 = scmp.lt.s32.totalorder %s1243_s21, %s1239_s18 }
 0x115   : > { %p1241_p5 = pnand %p1240_p0, %p1538_p11  ;;  %p1246_p13 = por %p1245_p12, %p1244_p6 }
 0x117   : > { %p1242_p4 = pneg %p1241_p5 }
 0x119   : > { %p1247_p7 = pnand %p1246_p13, %p1242_p4 }
 0x11b   : > { %1250 = shalt.err (!%p1247_p7)
}
 0x11c   : > { %s1376_s26 = smov 128   ;;  %s1377_s11 = smov 8  }
 0x11d   : > { %1043 = dma.vmem_to_hbm [thread:$0]  (%p1538_p11), %s788_s25, 1024, %s790_s30, %s735_s22, %s1376_s26, %s1376_s26, %s1377_s11  }
 0x11e PF: > { %s2132_s1 = sld [smem:[#allocation31_spill]]  ;;  %p1047_p1 = pnand %p972_p3, %p1547_p9 }
 0x120   : > { %p1048_p8 = pneg %p1047_p1 }
 0x124   : > { %s804_s19 = sand.u32 1, %s2132_s1  }
 0x125   : > { %s805_s10 = scalar_lea.sflag [#allocation6], %s804_s19 }
 0x126   : > { %1310 = dma.done.wait (%p1048_p8), %s805_s10, 3072  }
 0x127   : > { %1312 = vsyncadd (%p1048_p8), %s805_s10, 4294964224  ;;  %s815_s8 = scalar_lea.sflag [#allocation14], %s804_s19 }
 0x128   : > { %1314 = dma.done.wait (%p1048_p8), %s815_s8, 1024  }
 0x129   : > { %1316 = vsyncadd (%p1048_p8), %s815_s8, 4294966272  ;;  %s2134_s9 = sld [smem:[#allocation33_spill]]  ;;  %s2140_s26 = smov %s1327_s0 }
 0x12a   : > { %s2135_s25 = sld [smem:[#allocation30_spill]]  ;;  %s2142_s27 = smov %s1335_s28 }
 0x12b   : > { %s2136_s13 = sld [smem:[#allocation40_spill]]  ;;  %s2143_s28 = smov %s1339_s29 }
 0x12c   : > { %s2137_s22 = sld [smem:[#allocation39_spill]]  ;;  %s2145_s30 = smov %s1347_s7 }
 0x12d   : > { %s2138_s24 = sld [smem:[#allocation32_spill]] }
 0x12e   : > { %s2139_s8 = sld [smem:[#allocation34_spill]] }
 0x12f   : > { %p37_p11 = scmp.ge.s32.totalorder %s2134_s9, 4  }
 0x131   : > { %s2141_s0 = smov %s2136_s13  ;;  %39 = sbr.rel (!%p37_p11) target bundleno = 22 (0x16), region = 158 }
 0x132   : > { %s2144_s29 = smov %s2137_s22 }
 0x133   : > { %s2146_s7 = smov %s2138_s24 }
 0x136   :  { %821 = vsyncpa [#allocation5], 1 }
 0x137   :  { %823 = vsyncpa [#allocation5 + $0x1], 1 }
 0x138   :  { %824 = vsyncpa [#allocation8], 1 }
 0x139   :  { %826 = vsyncpa [#allocation8 + $0x1], 1 }
 0x13a   :  { %827 = vsyncpa [#allocation11], 1 }
 0x13b   :  { %829 = vsyncpa [#allocation11 + $0x1], 1 }
 0x13c   :  { %830 = vsyncpa [#allocation6], 1 }
 0x13d   :  { %832 = vsyncpa [#allocation6 + $0x1], 1 }
 0x13e   :  { %833 = vsyncpa [#allocation14], 1 }
 0x13f   :  { %835 = vsyncpa [#allocation14 + $0x1], 1 }

</bundles_post_ra>
